<compile_context>
chip_gen: v5e
topology: v5e:2x2
jax: 0.10.0
libtpu: 0.0.40
codegen_flags: <defaults>
</compile_context>

<pallas_src>
import functools

import jax
import jax.numpy as jnp
from jax.experimental import pallas as pl
from jax.experimental.pallas import tpu as pltpu


def _emitter_kernel(z_ref, w123_ref, b123_ref, w4_ref, b4_ref, out_ref):
    """One batch tile; activations are laid out [features, tile_b] (batch on lanes).

    z_ref    : [latent_dim, tile_b]  bf16
    w123_ref : [obs_dim, latent_dim] bf16   (folded W3 @ W2 @ W1)
    b123_ref : [obs_dim, 1]          f32    (folded bias)
    w4_ref   : [out_dim, obs_dim]    bf16
    b4_ref   : [out_dim, 1]          f32
    out_ref  : [out_dim, tile_b]     f32
    """
    # p = ReLU(W123 @ z + b123); f32 accumulation on the MXU.
    p = jnp.dot(w123_ref[...], z_ref[...], preferred_element_type=jnp.float32)
    p = jnp.maximum(p + b123_ref[...], 0.0)

    # y = W4 @ p + b4
    y = jnp.dot(w4_ref[...], p.astype(jnp.bfloat16),
                preferred_element_type=jnp.float32)
    y = y + b4_ref[...]

    # Softplus(x) = log(1 + exp(x)), numerically stable form (exp on the EUP).
    out_ref[...] = jnp.maximum(y, 0.0) + jnp.log1p(jnp.exp(-jnp.abs(y)))


@functools.partial(jax.jit, static_argnames=("tile_b",))
def bernoulli_emitter_forward(z_t, folded_params, tile_b=128):
    """z_t: [B, latent_dim] float32. Returns [B, num_classes*obs_dim] float32."""
    (w123, b123), (w4, b4) = folded_params
    B, latent_dim = z_t.shape
    obs_dim = w123.shape[0]
    out_dim = w4.shape[0]

    tile_b = min(tile_b, B)
    grid = (pl.cdiv(B, tile_b),)

    # Layout plumbing in the wrapper: batch on lanes, bf16 matmul operands.
    z_T = z_t.T.astype(jnp.bfloat16)                       # [latent_dim, B]
    w123_bf = w123.astype(jnp.bfloat16)                    # [obs_dim, latent_dim]
    w4_bf = w4.astype(jnp.bfloat16)                        # [out_dim, obs_dim]
    b123_c = b123.reshape(obs_dim, 1).astype(jnp.float32)  # [obs_dim, 1]
    b4_c = b4.reshape(out_dim, 1).astype(jnp.float32)      # [out_dim, 1]

    def resident(arr):
        # Same block index every step -> weights/biases stay resident in VMEM.
        return pl.BlockSpec(arr.shape, lambda i: (0, 0))

    out_T = pl.pallas_call(
        _emitter_kernel,
        out_shape=jax.ShapeDtypeStruct((out_dim, B), jnp.float32),
        grid_spec=pltpu.PrefetchScalarGridSpec(
            num_scalar_prefetch=0,
            grid=grid,
            in_specs=[
                pl.BlockSpec((latent_dim, tile_b), lambda i: (0, i)),
                resident(w123_bf), resident(b123_c),
                resident(w4_bf), resident(b4_c),
            ],
            out_specs=pl.BlockSpec((out_dim, tile_b), lambda i: (0, i)),
        ),
        compiler_params=pltpu.CompilerParams(
            dimension_semantics=("parallel",)),
    )(z_T, w123_bf, b123_c, w4_bf, b4_c)

    return out_T.T


def init_linear(key, in_features, out_features):
    """torch.nn.Linear-style init: W [out, in], b [out], U(-1/sqrt(in), 1/sqrt(in))."""
    kw, kb = jax.random.split(key)
    bound = 1.0 / jnp.sqrt(jnp.float32(in_features))
    w = jax.random.uniform(kw, (out_features, in_features), jnp.float32,
                           minval=-bound, maxval=bound)
    b = jax.random.uniform(kb, (out_features,), jnp.float32,
                           minval=-bound, maxval=bound)
    return w, b


def fold_params(params):
    """Fold the affine-only chain L3(L2(L1(x))) into one (W123, b123). Done once offline."""
    (w1, b1), (w2, b2), (w3, b3), (w4, b4) = params
    w123 = w3 @ w2 @ w1                       # [obs_dim, latent_dim]
    b123 = w3 @ (w2 @ b1 + b2) + b3           # [obs_dim]
    return (w123, b123), (w4, b4)


def reference_forward(z_t, params):
    """Pure-JAX f32, unfolded reference (mirrors the PyTorch module exactly)."""
    (w1, b1), (w2, b2), (w3, b3), (w4, b4) = params
    h1 = z_t @ w1.T + b1
    h2 = h1 @ w2.T + b2
    p = jnp.maximum(h2 @ w3.T + b3, 0.0)
    return jax.nn.softplus(p @ w4.T + b4)


def reference_forward_folded_bf16(z_t, folded_params):
    """Pure-JAX reference with the exact dtype/folding path the kernel uses."""
    (w123, b123), (w4, b4) = folded_params
    z_T = z_t.T.astype(jnp.bfloat16)
    p = jnp.dot(w123.astype(jnp.bfloat16), z_T,
                preferred_element_type=jnp.float32) + b123[:, None]
    p = jnp.maximum(p, 0.0)
    y = jnp.dot(w4.astype(jnp.bfloat16), p.astype(jnp.bfloat16),
                preferred_element_type=jnp.float32) + b4[:, None]
    return jax.nn.softplus(y).T


if __name__ == "__main__":
    # Small shapes consistent with the module; num_classes must be 1 for the
    # forward pass to be shape-consistent (see note above).
    obs_dim = 16
    num_classes = 1
    latent_dim = 32
    emission_dim = 32
    batch = 256          # 2 grid steps at tile_b=128 (lets v7x use both TCs)

    key = jax.random.PRNGKey(0)
    kz, k1, k2, k3, k4, kg1, kg2 = jax.random.split(key, 7)

    # Parameters used by forward().
    params = (
        init_linear(k1, latent_dim, emission_dim),                      # lin_prop_latent_to_hidden
        init_linear(k2, emission_dim, emission_dim),                    # lin_prop_hidden_to_hidden
        init_linear(k3, emission_dim, obs_dim),                         # lin_prop_hidden_to_props
        init_linear(k4, num_classes * obs_dim, num_classes * obs_dim),  # lin_props
    )
    # Gate layers exist in __init__ but are unused in forward(); initialize for
    # parity with the module's parameter set (not passed to the kernel).
    _unused_gate = (init_linear(kg1, latent_dim, emission_dim),
                    init_linear(kg2, emission_dim, obs_dim))

    folded = fold_params(params)

    z_t = jax.random.normal(kz, (batch, latent_dim), jnp.float32)

    out = bernoulli_emitter_forward(z_t, folded, tile_b=128)
    out = jax.block_until_ready(out)
    assert out.shape == (batch, num_classes * obs_dim)

    # Strict check vs a pure-JAX reference using identical folding + dtypes.
    ref_matched = reference_forward_folded_bf16(z_t, folded)
    assert jnp.allclose(out, ref_matched, atol=1e-4, rtol=1e-4), \
        "mismatch vs dtype-matched reference"

    # Loose check vs the original f32, unfolded module semantics (differences
    # come only from bf16 rounding of matmul operands + fold reassociation).
    ref_full = reference_forward(z_t, params)
    assert jnp.allclose(out, ref_full, atol=5e-2, rtol=5e-2), \
        "mismatch vs f32 unfolded reference"

    print("KERNEL_OK")
</pallas_src>

<mosaic_0001>
module attributes {stable_mosaic.version = 11 : i64} {
  func.func @_emitter_kernel(%arg0: i32, %arg1: memref<32x128xbf16, #tpu.memory_space<vmem>>, %arg2: memref<16x32xbf16, #tpu.memory_space<vmem>>, %arg3: memref<16x1xf32, #tpu.memory_space<vmem>>, %arg4: memref<16x16xbf16, #tpu.memory_space<vmem>>, %arg5: memref<16x1xf32, #tpu.memory_space<vmem>>, %arg6: memref<16x128xf32, #tpu.memory_space<vmem>>) attributes {dimension_semantics = [#tpu.dimension_semantics<parallel>], iteration_bounds = array<i64: 2>, scalar_prefetch = 0 : i64, scratch_operands = 0 : i64, tpu.core_type = #tpu.core_type<tc>, window_params = [{transform_indices = @transform_0, window_bounds = array<i64: 32, 128>}, {pipeline_mode = #tpu.pipeline_mode<synchronous>, transform_indices = @transform_1, window_bounds = array<i64: 16, 32>}, {pipeline_mode = #tpu.pipeline_mode<synchronous>, transform_indices = @transform_2, window_bounds = array<i64: 16, 1>}, {pipeline_mode = #tpu.pipeline_mode<synchronous>, transform_indices = @transform_3, window_bounds = array<i64: 16, 16>}, {pipeline_mode = #tpu.pipeline_mode<synchronous>, transform_indices = @transform_4, window_bounds = array<i64: 16, 1>}, {transform_indices = @transform_5, window_bounds = array<i64: 16, 128>}]} {
    %c0 = arith.constant 0 : index
    %c0_0 = arith.constant 0 : index
    %0 = vector.load %arg2[%c0, %c0_0] : memref<16x32xbf16, #tpu.memory_space<vmem>>, vector<16x32xbf16>
    %c0_1 = arith.constant 0 : index
    %c0_2 = arith.constant 0 : index
    %1 = vector.load %arg1[%c0_1, %c0_2] : memref<32x128xbf16, #tpu.memory_space<vmem>>, vector<32x128xbf16>
    %cst = arith.constant dense<0.000000e+00> : vector<16x128xf32>
    %2 = tpu.matmul %0, %1, %cst {dimension_numbers = #tpu.dot_dimension_numbers<[1], [0], [0], [1], [0, 0, 1, 1], [], []>} : vector<16x32xbf16>, vector<32x128xbf16>, vector<16x128xf32> -> vector<16x128xf32>
    %c0_3 = arith.constant 0 : index
    %c0_4 = arith.constant 0 : index
    %3 = vector.load %arg3[%c0_3, %c0_4] : memref<16x1xf32, #tpu.memory_space<vmem>>, vector<16x1xf32>
    %4 = vector.broadcast %3 : vector<16x1xf32> to vector<16x128xf32>
    %5 = arith.addf %2, %4 : vector<16x128xf32>
    %cst_5 = arith.constant 0.000000e+00 : f32
    %6 = vector.broadcast %cst_5 : f32 to vector<16x128xf32>
    %7 = arith.maximumf %5, %6 : vector<16x128xf32>
    %c0_6 = arith.constant 0 : index
    %c0_7 = arith.constant 0 : index
    %8 = vector.load %arg4[%c0_6, %c0_7] : memref<16x16xbf16, #tpu.memory_space<vmem>>, vector<16x16xbf16>
    %9 = arith.truncf %7 : vector<16x128xf32> to vector<16x128xbf16>
    %cst_8 = arith.constant dense<0.000000e+00> : vector<16x128xf32>
    %10 = tpu.matmul %8, %9, %cst_8 {dimension_numbers = #tpu.dot_dimension_numbers<[1], [0], [0], [1], [0, 0, 1, 1], [], []>} : vector<16x16xbf16>, vector<16x128xbf16>, vector<16x128xf32> -> vector<16x128xf32>
    %c0_9 = arith.constant 0 : index
    %c0_10 = arith.constant 0 : index
    %11 = vector.load %arg5[%c0_9, %c0_10] : memref<16x1xf32, #tpu.memory_space<vmem>>, vector<16x1xf32>
    %12 = vector.broadcast %11 : vector<16x1xf32> to vector<16x128xf32>
    %13 = arith.addf %10, %12 : vector<16x128xf32>
    %cst_11 = arith.constant 0.000000e+00 : f32
    %14 = vector.broadcast %cst_11 : f32 to vector<16x128xf32>
    %15 = arith.maximumf %13, %14 : vector<16x128xf32>
    %16 = math.absf %13 : vector<16x128xf32>
    %cst_12 = arith.constant 0.000000e+00 : f32
    %17 = vector.broadcast %cst_12 : f32 to vector<16x128xf32>
    %18 = arith.subf %17, %16 : vector<16x128xf32>
    %19 = math.exp %18 : vector<16x128xf32>
    %20 = math.log1p %19 : vector<16x128xf32>
    %21 = arith.addf %15, %20 : vector<16x128xf32>
    %c0_13 = arith.constant 0 : index
    %c0_14 = arith.constant 0 : index
    %22 = vector.load %arg6[%c0_13, %c0_14] : memref<16x128xf32, #tpu.memory_space<vmem>>, vector<16x128xf32>
    tpu.vector_store %arg6[%c0_13, %c0_14], %21 {strides = array<i32>} : memref<16x128xf32, #tpu.memory_space<vmem>>, vector<16x128xf32>,
    return
  }
  func.func @transform_0(%arg0: i32) -> (i32, i32) {
    %c0_i32 = arith.constant 0 : i32
    %c0_i32_0 = arith.constant 0 : i32
    return %c0_i32, %arg0 : i32, i32
  }
  func.func @transform_1(%arg0: i32) -> (i32, i32) {
    %c0_i32 = arith.constant 0 : i32
    %c0_i32_0 = arith.constant 0 : i32
    %c0_i32_1 = arith.constant 0 : i32
    return %c0_i32, %c0_i32_0 : i32, i32
  }
  func.func @transform_2(%arg0: i32) -> (i32, i32) {
    %c0_i32 = arith.constant 0 : i32
    %c0_i32_0 = arith.constant 0 : i32
    %c0_i32_1 = arith.constant 0 : i32
    return %c0_i32, %c0_i32_0 : i32, i32
  }
  func.func @transform_3(%arg0: i32) -> (i32, i32) {
    %c0_i32 = arith.constant 0 : i32
    %c0_i32_0 = arith.constant 0 : i32
    %c0_i32_1 = arith.constant 0 : i32
    return %c0_i32, %c0_i32_0 : i32, i32
  }
  func.func @transform_4(%arg0: i32) -> (i32, i32) {
    %c0_i32 = arith.constant 0 : i32
    %c0_i32_0 = arith.constant 0 : i32
    %c0_i32_1 = arith.constant 0 : i32
    return %c0_i32, %c0_i32_0 : i32, i32
  }
  func.func @transform_5(%arg0: i32) -> (i32, i32) {
    %c0_i32 = arith.constant 0 : i32
    %c0_i32_0 = arith.constant 0 : i32
    return %c0_i32, %arg0 : i32, i32
  }
}

</mosaic_0001>

<bundles_post_ra>
// kernel: bernoulli_emitter_forward.1
= control target key start
LH: loop header
LB: loop body
LE: loop exit
PB: predicated region body
PF: predicated region fallthrough
CT: control target
= control target key end

     0   :  { %10 = vsyncpa [#allocation4], 0  ;;  %s791_s0 = inlined_call_operand.vmem [shape: bf16[32,256], index: 0, kind: input, shape index: {}]   ;;  %s792_s1 = inlined_call_operand.vmem [shape: bf16[16,32], index: 1, kind: input, shape index: {}]   ;;  %s793_s2 = inlined_call_operand.vmem [shape: f32[16,1], index: 2, kind: input, shape index: {}]   ;;  %s794_s3 = inlined_call_operand.vmem [shape: bf16[16,16], index: 3, kind: input, shape index: {}]   ;;  %s795_s4 = inlined_call_operand.vmem [shape: f32[16,1], index: 4, kind: input, shape index: {}]   ;;  %s796_s5 = inlined_call_operand.hbm [shape: f32[16,256], index: 5, kind: output, shape index: {}]  }
   0x1   :  { %12 = vsyncpa [#allocation4 + $0x1], 0  ;;  %s672_s18 = smov 0   ;;  %s674_s19 = smov 0  }
   0x2   :  { %s676_s20 = smov 0   ;;  %s678_s21 = smov 0  }
   0x3 LB: > { %s486_s22 = sadd.s32 4294967295, %s636_s21   ;;  %s487_s23 = sadd.s32 4294967294, %s636_s21   ;;  %s636_s21 = sphi %s678_s21, %s802_s21   ;;  %s632_s20 = sphi %s676_s20, %s801_s20   ;;  %s628_s19 = sphi %s674_s19, %s800_s19   ;;  %s624_s18 = sphi %s672_s18, %s799_s18  }
   0x4   : > { %s695_s24 = sadd.s32 1, %s636_s21   ;;  %s25_s25 = sadd.s32 1, %s632_s20 }
   0x5   : > { %s22_s26 = ssub.s32 %s636_s21, %s695_s24  ;;  %p32_p0 = scmp.ne.s32.totalorder %s632_s20, %s628_s19 }
   0x6   : > { %p23_p1 = scmp.eq.s32.totalorder %s22_s26, 0  ;;  %p33_p2 = scmp.eq.s32.totalorder %s636_s21, 0 }
   0x7   : > { %p146_p3 = scmp.eq.s32.totalorder %s486_s22, 1  ;;  %p151_p4 = scmp.ne.s32.totalorder %s628_s19, %s624_s18 }
   0x8   : > { %s708_s27 = scalar_select %p23_p1, %s632_s20, %s25_s25  }
   0x9   : > { %p34_p5 = por %p33_p2, %p32_p0  ;;  %p710_p6 = por %p146_p3, %p32_p0 }
   0xa   : > { %p152_p7 = scmp.eq.s32.totalorder %s487_s23, 1  ;;  %p489_p9 = scmp.ge.s32.totalorder %s636_s21, 2 }
   0xc   : > { %p714_p8 = por %p152_p7, %p151_p4  ;;  %180 = sbr.rel (%p489_p9) target bundleno = 25 (0x19), region = 32 }
  0x11   : > { %183 = sbr.rel (!%p34_p5) target bundleno = 25 (0x19), region = 36  ;;  %s185_s30 = sand.u32 (%p34_p5), 1, %s632_s20  }
  0x12   : > { %s491_s6 = sshll.u32 (%p34_p5), %s636_s21, 2  ;;  %s490_s7 = sshll.u32 (%p34_p5), %s185_s30, 4 }
  0x13   : > { %s189_s10 = scalar_lea.vmem (%p34_p5), %s791_s0, %s491_s6  ;;  %s187_s11 = scalar_lea.vmem (%p34_p5), [#allocation2], %s490_s7 }
  0x14   : > { %v206_v0 = vld [vmem:[%s189_s10] sm:$0xf] (%p34_p5)  ;;  %v208_v1 = vld [vmem:[%s189_s10 + $0x8] sm:$0xf] (%p34_p5)  ;;  %v210_v2 = vld [vmem:[%s189_s10 + $0x10] sm:$0xf] (%p34_p5) }
  0x15   : > { %207 = vst [vmem:[%s187_s11] sm:$0xf] (%p34_p5), %v206_v0  ;;  %v212_v3 = vld [vmem:[%s189_s10 + $0x18] sm:$0xf] (%p34_p5) }
  0x16   : > { %209 = vst [vmem:[%s187_s11 + $0x4] sm:$0xf] %v208_v1 }
  0x17   : > { %211 = vst [vmem:[%s187_s11 + $0x8] sm:$0xf] %v210_v2 }
  0x18   : > { %213 = vst [vmem:[%s187_s11 + $0xc] sm:$0xf] %v212_v3 }
  0x19 PF: > { %p492_p10 = scmp.ge.s32.totalorder %s636_s21, 1  ;;  %p244_p11 = scmp.lt.s32.totalorder %s636_s21, 3 }
  0x1b   : > { %p245_p12 = pnand %p492_p10, %p244_p11 }
  0x1c   : > { %s251_s12 = sand.u32 (!%p245_p12), 1, %s628_s19   ;;  %s514_s11 = sshll.u32 (!%p245_p12), %s486_s22, 3 }
  0x1d   : > { %248 = sbr.rel (%p245_p12) target bundleno = 354 (0x162), region = 77  ;;  %s734_s15 = sshll.u32 (!%p245_p12), %s251_s12, 4 }
  0x1e   : > { %s253_s16 = scalar_lea.vmem (!%p245_p12), [#allocation2], %s734_s15  ;;  %s277_s17 = scalar_lea.vmem (!%p245_p12), [#allocation3], %s734_s15 }
  0x1f   : > { %s416_s23 = sshll.u32 (!%p245_p12), %s277_s17, 4  ;;  %s405_s22 = scalar_lea.sflag (!%p245_p12), [#allocation4], %s251_s12  ;;  %s417_s23 = int_to_ptr.vmem [resolvable:$true] %s416_s23 }
  0x20   : > { %s594_s7 = scalar_lea.hbm (!%p245_p12), %s796_s5, 32 }
  0x22   : > { %v285_v4 = vld [vmem:[%s793_s2] sm:$0xff]  ;;  %v638_v5 = vmov 0   ;;  %v519_v6 = vld [vmem:[%s253_s16 + $0x8] sm:$0xff]  ;;  %vm314_vm0 = vcmask 261120   ;;  %vm354_vm1 = vcmask 130048  }
  0x23   : > { %564 = vset.pattern.permute.xlu0 %v638_v5  ;;  %565 = vset.pattern.permute.xlu1 %v638_v5  ;;  %v518_v7 = vld [vmem:[%s253_s16] sm:$0xff]  ;;  %v286_v8 = vld [vmem:[%s793_s2 + $0x8] sm:$0xff]  ;;  %s415_s16 = scalar_lea.hbm %s796_s5, %s514_s11 }
  0x24   : > { %289 = vperm.xlu0 %564, %v285_v4   ;;  %324 = vmatpush.bf16.msra.mxu0 %v519_v6  ;;  %v517_v9 = vld [vmem:[%s792_s1] sm:$0xff]  ;;  %v338_v11 = vld [vmem:[%s795_s4 + $0x8] sm:$0xff]  ;;  %s758_s25 = sshll.u32 %s415_s16, 4  ;;  %s419_s25 = int_to_ptr.hbm [resolvable:$true] %s758_s25 }
  0x25   : > { %v337_v10 = vld [vmem:[%s795_s4] sm:$0xff]  ;;  %s588_s15 = sshra.s32 %s419_s25, 4  ;;  %s589_s15 = int_to_ptr.hbm [resolvable:$true] %s588_s15 }
  0x26   : > { %341 = vperm.xlu1 %565, %v337_v10   ;;  %v520_v21 = vld [vmem:[%s794_s3] sm:$0xff]  ;;  %s590_s26 = scalar_lea.hbm %s589_s15, 16  ;;  %p595_p2 = scmp.lt.s32.totalorder %s589_s15, %s796_s5 }
  0x27   : > { %p591_p13 = scmp.ne.s32.totalorder %s589_s15, %s590_s26  ;;  %p596_p3 = scmp.lt.s32.totalorder %s594_s7, %s590_s26 }
  0x28   : > { %325 = vmatpush.bf16.msra.mxu0 %v518_v7 }
  0x29   : > { %p592_p0 = pnand %p591_p13, %p710_p6  ;;  %p597_p4 = por %p596_p3, %p595_p2 }
  0x2b   : > { %507 = vmatmul.msk.bf16.vlgmr.msra.gmra.mxu0 %vm314_vm0, %v517_v9  ;;  %p593_p1 = pneg %p592_p0 }
  0x2c   : > { %294 = vperm.xlu0 %564, %v286_v8  }
  0x2d   : > { %p598_p5 = pnand %p597_p4, %p593_p1 }
  0x2e   : > { %346 = vperm.xlu1 %565, %v338_v11  }
  0x96   : > { %v290_v12 = vpop.permute.xlu0 %289 }
  0x98   : > { %v342_v22 = vpop.permute.xlu1 %341 }
  0x9e   : > { %v295_v15 = vpop.permute.xlu0 %294 }
  0xa0   : > { %v347_v28 = vpop.permute.xlu1 %346 }
  0xa8   : > { %v327_v13 = vpop.f32.mrf.mxu0 }
  0xa9   : > { %v328_v14 = vadd.f32 %v327_v13, %v290_v12 }
  0xab   : > { %v332_v18 = vmax.f32 %v328_v14, 0.0 }
  0xb0   : > { %v329_v16 = vpop.f32.mrf.mxu0 }
  0xb1   : > { %v330_v17 = vadd.f32 %v329_v16, %v295_v15 }
  0xb3   : > { %v333_v19 = vmax.f32 %v330_v17, 0.0 }
  0xb5   : > { %v336_v20 = vpack.c.bf16 %v333_v19, %v332_v18 }
  0xb7   : > { %365 = vmatpush.bf16.msra.mxu1 %v336_v20 }
  0xba   : > { %512 = vmatmul.msk.bf16.vlgmr.msra.gmra.mxu1 %vm354_vm1, %v520_v21 }
 0x137   : > { %v367_v23 = vpop.f32.mrf.mxu1 }
 0x138   : > { %v368_v24 = vadd.f32 %v367_v23, %v342_v22 }
 0x13a   : > { %v374_v25 = vand.u32 2147483647, %v368_v24  ;;  %v372_v45 = vmax.f32 %v368_v24, 0.0 }
 0x13c   : > { %v376_v26 = vsub.f32 0.0, %v374_v25 }
 0x13e   : > { %v378_v27 = vmul.f32 1.442695, %v376_v26 }
 0x13f   : > { %v369_v29 = vpop.f32.mrf.mxu1 }
 0x140   : > { %566 = vpow2.f32 %v378_v27  ;;  %v370_v30 = vadd.f32 %v369_v29, %v347_v28 }
 0x142   : > { %v375_v31 = vand.u32 2147483647, %v370_v30  ;;  %v373_v53 = vmax.f32 %v370_v30, 0.0 }
 0x144   : > { %v377_v32 = vsub.f32 0.0, %v375_v31 }
 0x146   : > { %v567_v33 = vpop.eup %566  ;;  %v380_v34 = vmul.f32 1.442695, %v377_v32 }
 0x147   : > { %v382_v35 = vadd.f32 1.0, %v567_v33  ;;  %v385_v36 = vmul.f32 -0.5, %v567_v33  ;;  %v388_v38 = vand.u32 2147483647, %v567_v33 }
 0x148   : > { %568 = vpow2.f32 %v380_v34 }
 0x149   : > { %570 = vlog2.f32 %v382_v35  ;;  %v386_v37 = vadd.f32 1.0, %v385_v36  ;;  %vm389_vm2 = vcmp.lt.f32.partialorder %v388_v38, 0.0004427343 }
 0x14b   : > { %v387_v43 = vmul.f32 %v567_v33, %v386_v37 }
 0x14e   : > { %v569_v39 = vpop.eup %568 }
 0x14f   : > { %v571_v40 = vpop.eup %570  ;;  %v391_v41 = vadd.f32 1.0, %v569_v39  ;;  %v394_v44 = vmul.f32 -0.5, %v569_v39  ;;  %v397_v49 = vand.u32 2147483647, %v569_v39 }
 0x150   : > { %v384_v42 = vmul.f32 0.6931472, %v571_v40 }
 0x151   : > { %572 = vlog2.f32 %v391_v41  ;;  %v395_v48 = vadd.f32 1.0, %v394_v44  ;;  %vm398_vm3 = vcmp.lt.f32.partialorder %v397_v49, 0.0004427343 }
 0x152   : > { %v390_v46 = vsel %vm389_vm2, %v387_v43, %v384_v42 }
 0x153   : > { %v400_v47 = vadd.f32 %v390_v46, %v372_v45  ;;  %v396_v52 = vmul.f32 %v569_v39, %v395_v48 }
 0x155   : > { %402 = vst [vmem:[%s277_s17] sm:$0xff] %v400_v47 }
 0x157   : > { %v573_v50 = vpop.eup %572 }
 0x158   : > { %v393_v51 = vmul.f32 0.6931472, %v573_v50 }
 0x15a   : > { %v399_v54 = vsel %vm398_vm3, %v396_v52, %v393_v51 }
 0x15b   : > { %v401_v55 = vadd.f32 %v399_v54, %v373_v53 }
 0x15d   : > { %403 = vst [vmem:[%s277_s17 + $0x8] sm:$0xff] %v401_v55 }
 0x15e   : > { %601 = shalt.err (!%p598_p5)
}
 0x15f   : > { %s639_s12 = smov 128   ;;  %s640_s10 = smov 256  }
 0x160   : > { %s641_s11 = smov 8  }
 0x161   : > { %521 = dma.vmem_to_hbm [thread:$0]  (%p710_p6), %s417_s23, 256, %s419_s25, %s405_s22, %s639_s12, %s640_s10, %s641_s11  }
 0x162 PF: > { %s433_s13 = sand.u32 1, %s624_s18   ;;  %p524_p7 = pnand %p489_p9, %p714_p8 }
 0x163   : > { %s434_s14 = scalar_lea.sflag [#allocation4], %s433_s13 }
 0x164   : > { %p525_p10 = pneg %p524_p7 }
 0x166   : > { %619 = dma.done.wait (%p525_p10), %s434_s14, 256  }
 0x167   : > { %621 = vsyncadd (%p525_p10), %s434_s14, 4294967040  ;;  %p15_p11 = scmp.ge.s32.totalorder %s695_s24, 4   ;;  %s799_s18 = smov %s628_s19 }
 0x168   : > { %s800_s19 = smov %s632_s20  ;;  %s801_s20 = smov %s708_s27 }
 0x169   : > { %s802_s21 = smov %s695_s24  ;;  %17 = sbr.rel (!%p15_p11) target bundleno = 3 (0x3), region = 121 }
 0x16e   :  { %440 = vsyncpa [#allocation4], 1 }
 0x16f   :  { %442 = vsyncpa [#allocation4 + $0x1], 1 }

</bundles_post_ra>
